<compile_context>
chip_gen: v7x
topology: tpu7x:2x2x1
jax: 0.10.0
libtpu: 0.0.40
codegen_flags: <defaults>
</compile_context>

<pallas_src>
import functools
import math

import jax
import jax.numpy as jnp
from jax.experimental import pallas as pl
from jax.experimental.pallas import tpu as pltpu


def _classifier_kernel(x_ref, w_ref, b_ref, o_ref):
    # (TB, D) @ (D, N_pad) on the MXU with f32 accumulation, bias add on the VPU.
    o_ref[...] = (
        jnp.dot(x_ref[...], w_ref[...], preferred_element_type=jnp.float32)
        + b_ref[...]
    ).astype(o_ref.dtype)


def _round_up(x, m):
    return ((x + m - 1) // m) * m


@functools.partial(jax.jit, static_argnames=("block_b",))
def latent_classifier_forward(x, w, b, *, block_b=128):
    """Forward pass of latent_classifier.

    x: (B, latent_dims) f32
    w: (latent_dims, num_classes) f32  -- PyTorch Linear weight pre-transposed to (in, out)
    b: (num_classes,) f32
    returns: (B, num_classes) f32
    """
    B, D = x.shape
    N = w.shape[1]

    # Lane-dense class dim: pad to a multiple of 128 so every store is a full vreg row.
    N_pad = _round_up(N, 128)
    # Batch tile: multiple of 8 (sublane granularity), capped at block_b.
    TB = _round_up(min(block_b, B), 8)
    B_pad = _round_up(B, TB)

    # Only materialize padded copies when the shapes actually need it.
    x_p = x if B_pad == B else jnp.pad(x, ((0, B_pad - B), (0, 0)))
    w_p = w if N_pad == N else jnp.pad(w, ((0, 0), (0, N_pad - N)))
    b2 = b.reshape(1, -1)
    b_p = b2 if N_pad == N else jnp.pad(b2, ((0, 0), (0, N_pad - N)))

    grid = (B_pad // TB,)

    cost = pl.CostEstimate(
        flops=2 * B_pad * D * N_pad + B_pad * N_pad,
        transcendentals=0,
        bytes_accessed=4 * (B_pad * D + D * N_pad + N_pad + B_pad * N_pad),
    )

    y_p = pl.pallas_call(
        _classifier_kernel,
        out_shape=jax.ShapeDtypeStruct((B_pad, N_pad), jnp.float32),
        grid=grid,
        in_specs=[
            pl.BlockSpec((TB, D), lambda i: (i, 0)),      # x: streamed per batch tile
            pl.BlockSpec((D, N_pad), lambda i: (0, 0)),   # W: VMEM-resident across steps
            pl.BlockSpec((1, N_pad), lambda i: (0, 0)),   # b: VMEM-resident across steps
        ],
        out_specs=pl.BlockSpec((TB, N_pad), lambda i: (i, 0)),
        compiler_params=pltpu.CompilerParams(
            dimension_semantics=("parallel",),
        ),
        cost_estimate=cost,
    )(x_p, w_p, b_p)

    if B_pad == B and N_pad == N:
        return y_p
    return y_p[:B, :N]


if __name__ == "__main__":
    # Small shapes consistent with the module: latent_dims -> num_classes.
    batch = 20
    latent_dims = 32
    num_classes = 10

    key = jax.random.PRNGKey(0)
    kx, kw, kb = jax.random.split(key, 3)

    # PyTorch nn.Linear default init (uniform +/- 1/sqrt(fan_in)); weight stored as (in, out).
    bound = 1.0 / math.sqrt(latent_dims)
    w = jax.random.uniform(kw, (latent_dims, num_classes), jnp.float32, -bound, bound)
    b = jax.random.uniform(kb, (num_classes,), jnp.float32, -bound, bound)
    x = jax.random.normal(kx, (batch, latent_dims), jnp.float32)

    # block_b=8 -> 3 grid steps on the padded batch of 24: exercises the pipelined path.
    y = latent_classifier_forward(x, w, b, block_b=8)
    jax.block_until_ready(y)

    # Correctness check against a pure-JAX reference of the PyTorch forward.
    y_ref = x @ w + b
    assert y.shape == (batch, num_classes)
    assert jnp.allclose(y, y_ref, atol=1e-5, rtol=1e-5)

    # Also exercise the single-tile (no batch padding needed for grid) path.
    y2 = latent_classifier_forward(x, w, b, block_b=128)
    jax.block_until_ready(y2)
    assert jnp.allclose(y2, y_ref, atol=1e-5, rtol=1e-5)

    print("KERNEL_OK")
</pallas_src>

<mosaic_0001>
module attributes {stable_mosaic.version = 11 : i64} {
  func.func @_classifier_kernel(%arg0: i32, %arg1: memref<8x32xf32, #tpu.memory_space<vmem>>, %arg2: memref<32x128xf32, #tpu.memory_space<vmem>>, %arg3: memref<1x128xf32, #tpu.memory_space<vmem>>, %arg4: memref<8x128xf32, #tpu.memory_space<vmem>>) attributes {dimension_semantics = [#tpu.dimension_semantics<parallel>], iteration_bounds = array<i64: 3>, scalar_prefetch = 0 : i64, scratch_operands = 0 : i64, tpu.core_type = #tpu.core_type<tc>, window_params = [{transform_indices = @transform_0, window_bounds = array<i64: 8, 32>}, {pipeline_mode = #tpu.pipeline_mode<synchronous>, transform_indices = @transform_1, window_bounds = array<i64: 32, 128>}, {pipeline_mode = #tpu.pipeline_mode<synchronous>, transform_indices = @transform_2, window_bounds = array<i64: 1, 128>}, {transform_indices = @transform_3, window_bounds = array<i64: 8, 128>}]} {
    %c0 = arith.constant 0 : index
    %c0_0 = arith.constant 0 : index
    %0 = vector.load %arg1[%c0, %c0_0] : memref<8x32xf32, #tpu.memory_space<vmem>>, vector<8x32xf32>
    %c0_1 = arith.constant 0 : index
    %c0_2 = arith.constant 0 : index
    %1 = vector.load %arg2[%c0_1, %c0_2] : memref<32x128xf32, #tpu.memory_space<vmem>>, vector<32x128xf32>
    %cst = arith.constant dense<0.000000e+00> : vector<8x128xf32>
    %2 = tpu.matmul %0, %1, %cst {dimension_numbers = #tpu.dot_dimension_numbers<[1], [0], [0], [1], [0, 0, 1, 1], [], []>} : vector<8x32xf32>, vector<32x128xf32>, vector<8x128xf32> -> vector<8x128xf32>
    %c0_3 = arith.constant 0 : index
    %c0_4 = arith.constant 0 : index
    %3 = vector.load %arg3[%c0_3, %c0_4] : memref<1x128xf32, #tpu.memory_space<vmem>>, vector<1x128xf32>
    %4 = vector.broadcast %3 : vector<1x128xf32> to vector<8x128xf32>
    %5 = arith.addf %2, %4 : vector<8x128xf32>
    %c0_5 = arith.constant 0 : index
    %c0_6 = arith.constant 0 : index
    %6 = vector.load %arg4[%c0_5, %c0_6] : memref<8x128xf32, #tpu.memory_space<vmem>>, vector<8x128xf32>
    tpu.vector_store %arg4[%c0_5, %c0_6], %5 {strides = array<i32>} : memref<8x128xf32, #tpu.memory_space<vmem>>, vector<8x128xf32>,
    return
  }
  func.func @transform_0(%arg0: i32) -> (i32, i32) {
    %c0_i32 = arith.constant 0 : i32
    %c0_i32_0 = arith.constant 0 : i32
    return %arg0, %c0_i32 : i32, i32
  }
  func.func @transform_1(%arg0: i32) -> (i32, i32) {
    %c0_i32 = arith.constant 0 : i32
    %c0_i32_0 = arith.constant 0 : i32
    %c0_i32_1 = arith.constant 0 : i32
    return %c0_i32, %c0_i32_0 : i32, i32
  }
  func.func @transform_2(%arg0: i32) -> (i32, i32) {
    %c0_i32 = arith.constant 0 : i32
    %c0_i32_0 = arith.constant 0 : i32
    %c0_i32_1 = arith.constant 0 : i32
    return %c0_i32, %c0_i32_0 : i32, i32
  }
  func.func @transform_3(%arg0: i32) -> (i32, i32) {
    %c0_i32 = arith.constant 0 : i32
    %c0_i32_0 = arith.constant 0 : i32
    return %arg0, %c0_i32 : i32, i32
  }
}

</mosaic_0001>

<bundles_post_ra>
// kernel: latent_classifier_forward.1
= control target key start
LH: loop header
LB: loop body
LE: loop exit
PB: predicated region body
PF: predicated region fallthrough
CT: control target
= control target key end

     0   :  { %s381_s12 = smov 0   ;;  %s413_s0 = inlined_call_operand.vmem [shape: f32[24,32], index: 0, kind: input, shape index: {}]   ;;  %s414_s1 = inlined_call_operand.vmem [shape: f32[32,128], index: 1, kind: input, shape index: {}]   ;;  %s415_s2 = inlined_call_operand.vmem [shape: f32[1,128], index: 2, kind: input, shape index: {}]   ;;  %s416_s3 = inlined_call_operand.vmem [shape: f32[24,128], index: 3, kind: output, shape index: {}]  }
   0x1 LB: > { %s306_s13 = sadd.s32 4294967295, %s356_s12   ;;  %p310_p0 = scmp.ge.s32.totalorder %s356_s12, 1  ;;  %s356_s12 = sphi %s381_s12, %s13_s12  }
   0x2   : > { %p136_p1 = scmp.lt.s32.totalorder %s356_s12, 4 }
   0x4   : > { %p137_p2 = pnand %p310_p0, %p136_p1 }
   0x5   : > { %v167_v0 = vld [vmem:[%s414_s1] sm:$0xff] (!%p137_p2)  ;;  %v168_v1 = vld [vmem:[%s414_s1 + $0x8] sm:$0xff] (!%p137_p2)  ;;  %v169_v2 = vld [vmem:[%s414_s1 + $0x10] sm:$0xff] (!%p137_p2)  ;;  %v358_v3 = vmov (!%p137_p2), 0.0|0.0   ;;  %vm359_vm0 = vmmov (!%p137_p2), 0   ;;  %v360_v6 = vmov (!%p137_p2), 0.0  }
   0x6   : > { %140 = sbr.rel (%p137_p2) target bundleno = 232 (0xe8), region = 32  ;;  %333 = vmatprep.subr.bf16.mxu0 (!%p137_p2), %v358_v3  ;;  %v334_v4 = vpack.c.bf16 (!%p137_p2), %v168_v1, %v167_v0  ;;  %v170_v5 = vld [vmem:[%s414_s1 + $0x18] sm:$0xff] (!%p137_p2)  ;;  %330 = vmatprep.mubr.msk.f32.mxu0 (!%p137_p2), %vm359_vm0, %v360_v6  ;;  %p158_p3 = scmp.lt.s32.totalorder (!%p137_p2), %s306_s13, 2  ;;  %vm178_vm1 = vcmask (!%p137_p2), 261120   ;;  %v313_v9 = vld [vmem:[%s415_s2] ss:$0 sm:$0xff] (!%p137_p2) }
   0x7   : > { %v337_v7 = vpack.c.bf16 (!%p137_p2), %v170_v5, %v169_v2 }
   0x8   : > { %335 = vmatpush3.bf16.msra.mxu0 (!%p137_p2), %v334_v4 }
   0x9   : > { %336 = vmatprep.subr.bf16.mxu0 (!%p137_p2), %v358_v3 }
   0xc   : > { %338 = vmatpush3.bf16.msra.mxu0 (!%p137_p2), %v337_v7 }
   0xd   : > { %s418_s13 = smov (!%p158_p3, %s306_s13), 2 }
   0xe   : > { %s311_s22 = sshll.u32 %s418_s13, 3 }
   0xf   : > { %s161_s25 = scalar_lea.vmem %s413_s0, %s311_s22  ;;  %s165_s30 = scalar_lea.vmem %s416_s3, %s311_s22 }
  0x10   : > { %v166_v8 = vld [vmem:[%s161_s25] sm:$0xff] }
  0x11   : > { %331 = vmatmul.mubr.msk.f32.vlgmr.msra.gmra.mrb[0].mxu0 %vm178_vm1, %v166_v8 }
  0xe4   : > { %v248_v10 = vpop.f32.mrb[0].mxu0 }
  0xe5   : > { %v249_v11 = vadd.f32 %v313_v9, %v248_v10  ;;  %v332_v12 = vpop.f32.mrb[1].mxu0 }
  0xe7   : > { %252 = vst [vmem:[%s165_s30] sm:$0xff] %v249_v11 }
  0xe8 PF: > { %s13_s12 = sadd.s32 1, %s356_s12  }
  0xe9   : > { %p10_p4 = scmp.ge.s32.totalorder %s13_s12, 5  }
  0xeb   :  { %12 = sbr.rel (!%p10_p4) target bundleno = 1 (0x1), region = 62 }

</bundles_post_ra>
